<compile_context>
chip_gen: v7x
topology: tpu7x:2x2x1
jax: 0.10.0
libtpu: 0.0.40
codegen_flags: <defaults>
</compile_context>

<pallas_src>
import functools

import jax
import jax.numpy as jnp
from jax.experimental import pallas as pl
from jax.experimental.pallas import tpu as pltpu

_LANE = 128
_V_ALIGN = 1024                       # vocab padding = streaming tile / resident chunk
_RESIDENT_TABLE_BYTES = 8 * 1024 * 1024   # conservative: fits comfortably on v5e/v6e/v7x


def _round_up(x, m):
    return ((x + m - 1) // m) * m


def prepare_embedding_table(emb_table):
    """Pad to lane-dense (Vp, Dp) and cast to bf16 ONCE at model init.

    Avoids re-reading/re-writing the whole table in HBM on every forward call.
    """
    vocab, d_embed = emb_table.shape
    d_pad = _round_up(max(d_embed, _LANE), _LANE)
    v_pad = _round_up(vocab, _V_ALIGN)
    out = jnp.zeros((v_pad, d_pad), jnp.bfloat16)
    out = out.at[:vocab, :d_embed].set(emb_table.astype(jnp.bfloat16))
    return out


# ---------------------------------------------------------------------------
# Resident-table kernel: whole (Vp, Dp) table lives in VMEM, grid = (row tiles,)
# ---------------------------------------------------------------------------
def _resident_embed_kernel(idx_ref, emb_ref, out_ref, *, chunk_v):
    """idx_ref (TN, L) int32, emb_ref (Vp, Dp) bf16 resident, out_ref (TN, Dp) f32."""
    idx = idx_ref[...]                                   # (TN, L)
    tn, n_tok = idx.shape
    v_pad, d_pad = emb_ref.shape

    acc = jnp.zeros((tn, d_pad), jnp.float32)
    # Chunk the vocab axis so the (TN, chunk) counts intermediate stays small;
    # the table itself is only DMA'd from HBM once for the whole call.
    for c in range(0, v_pad, chunk_v):                   # static, small trip count
        emb_c = emb_ref[pl.ds(c, chunk_v), :]            # (chunk, Dp) bf16
        vid = jax.lax.broadcasted_iota(jnp.int32, (tn, chunk_v), 1) + c
        cnt = jnp.zeros((tn, chunk_v), jnp.int32)
        for l in range(n_tok):                           # L is small & static
            cnt = cnt + (vid == idx[:, l:l + 1]).astype(jnp.int32)
        # counts are exact small integers (<= L) -> exact in bf16; f32 accumulate.
        acc = acc + jnp.dot(cnt.astype(emb_c.dtype), emb_c,
                            preferred_element_type=jnp.float32)

    sq = jnp.sum(acc * acc, axis=-1, keepdims=True)
    out_ref[...] = acc * jax.lax.rsqrt(jnp.maximum(sq, 1e-12))  # eps: no NaN rows


# ---------------------------------------------------------------------------
# Streaming kernel (fallback for tables too large to reside in VMEM)
# ---------------------------------------------------------------------------
def _streaming_embed_kernel(idx_ref, emb_ref, out_ref, acc_ref):
    v_blk = pl.program_id(1)

    @pl.when(v_blk == 0)
    def _init():
        acc_ref[...] = jnp.zeros_like(acc_ref)

    idx = idx_ref[...]                                   # (TN, L)
    emb = emb_ref[...]                                   # (TV, Dp) bf16
    tn, n_tok = idx.shape
    tv = emb.shape[0]
    v_start = v_blk * tv

    vid = jax.lax.broadcasted_iota(jnp.int32, (tn, tv), 1) + v_start
    cnt = jnp.zeros((tn, tv), jnp.int32)                 # int32 accumulate, cast once
    for l in range(n_tok):
        cnt = cnt + (vid == idx[:, l:l + 1]).astype(jnp.int32)

    acc_ref[...] += jnp.dot(cnt.astype(emb.dtype), emb,
                            preferred_element_type=jnp.float32)

    @pl.when(v_blk == pl.num_programs(1) - 1)
    def _finalize():
        s = acc_ref[...]
        sq = jnp.sum(s * s, axis=-1, keepdims=True)
        out_ref[...] = s * jax.lax.rsqrt(jnp.maximum(sq, 1e-12))


def starspace_embed(indices, emb_padded, d_embed, *, tile_n=256):
    """Embed N token-id rows -> (N, d_embed) L2-normalized bag-of-words embeddings.

    indices    : (N, L) int32, -1 for padding slots; N must be a multiple of tile_n.
    emb_padded : (Vp, Dp) bf16 table from prepare_embedding_table (padded once).
    """
    n_rows, n_tok = indices.shape
    v_pad, d_pad = emb_padded.shape
    assert n_rows % tile_n == 0, "pad N to a multiple of tile_n"
    assert v_pad % _V_ALIGN == 0 and d_pad % _LANE == 0

    table_bytes = v_pad * d_pad * emb_padded.dtype.itemsize

    if table_bytes <= _RESIDENT_TABLE_BYTES:
        # --- resident-table path: single grid axis, table DMA'd once total ---
        chunk_v = min(v_pad, _V_ALIGN)
        kernel = functools.partial(_resident_embed_kernel, chunk_v=chunk_v)
        # Budget 2x table (BlockSpec may double-buffer) + blocks + temps + margin.
        vmem_limit = int(2 * table_bytes + 16 * 1024 * 1024)
        out = pl.pallas_call(
            kernel,
            out_shape=jax.ShapeDtypeStruct((n_rows, d_pad), jnp.float32),
            grid_spec=pltpu.PrefetchScalarGridSpec(
                num_scalar_prefetch=0,
                grid=(n_rows // tile_n,),
                in_specs=[
                    pl.BlockSpec((tile_n, n_tok), lambda i: (i, 0)),
                    pl.BlockSpec((v_pad, d_pad), lambda i: (0, 0)),  # resident
                ],
                out_specs=pl.BlockSpec((tile_n, d_pad), lambda i: (i, 0)),
            ),
            compiler_params=pltpu.CompilerParams(
                dimension_semantics=("parallel",),
                vmem_limit_bytes=vmem_limit),
        )(indices, emb_padded)
    else:
        # --- streaming path: vocab axis streams through the pipeline ---
        tile_v = _V_ALIGN
        out = pl.pallas_call(
            _streaming_embed_kernel,
            out_shape=jax.ShapeDtypeStruct((n_rows, d_pad), jnp.float32),
            grid_spec=pltpu.PrefetchScalarGridSpec(
                num_scalar_prefetch=0,
                grid=(n_rows // tile_n, v_pad // tile_v),
                in_specs=[
                    pl.BlockSpec((tile_n, n_tok), lambda i, v: (i, 0)),
                    pl.BlockSpec((tile_v, d_pad), lambda i, v: (v, 0),
                                 pipeline_mode=pl.Buffered(3)),
                ],
                out_specs=pl.BlockSpec((tile_n, d_pad), lambda i, v: (i, 0)),
                scratch_shapes=[pltpu.VMEM((tile_n, d_pad), jnp.float32)],
            ),
            compiler_params=pltpu.CompilerParams(
                dimension_semantics=("parallel", "arbitrary"),
                vmem_limit_bytes=int(32 * 1024 * 1024)),
        )(indices, emb_padded)
    # TODO(synk): for very large vocabularies a scalar-prefetch row-gather
    # (pl.Element index_map on token ids) would beat the one-hot matmul.
    return out[:, :d_embed]


def starspace_forward(doc_tokens, doc_mask, emb_padded, d_embed, k_neg=3,
                      tile_n=256):
    """Mirrors StarSpace.forward.

    doc_tokens: (B, S, L) int32 token ids per doc / sentence
    doc_mask:   (B, S, L) f32   1.0 for real tokens, 0.0 for padding
    Returns (l_batch (B,1,D), r_batch (B,1,D), neg_batch (B,k_neg,D)).
    """
    B, S, L = doc_tokens.shape

    # TODO(synk): the module samples positive pairs / negatives with
    # np.random.choice on the host; replaced by deterministic selection (glue).
    sel = []
    for i in range(B):                      # l_batch: sentence a of each doc
        sel.append(i * S + 0)
    for i in range(B):                      # r_batch: sentence b of each doc
        sel.append(i * S + (1 if S > 1 else 0))
    for i in range(B):                      # neg_batch: sentences of other docs
        for j in range(k_neg):
            d = (i + 1 + (j % max(B - 1, 1))) % B
            sel.append(d * S + (j % S))
    sel = jnp.asarray(sel, dtype=jnp.int32)

    flat_tok = doc_tokens.reshape(B * S, L)
    flat_msk = doc_mask.reshape(B * S, L)
    idx = jnp.take(flat_tok, sel, axis=0).astype(jnp.int32)
    msk = jnp.take(flat_msk, sel, axis=0)
    idx = jnp.where(msk > 0, idx, -1)       # padding tokens can never match

    n_real = idx.shape[0]                   # B*(2 + k_neg)
    # Keep >= 2 row tiles when possible so both v7x TensorCores get work.
    tile_n = min(tile_n, _round_up(max(-(-n_real // 2), 8), 8))
    n_pad = (-n_real) % tile_n
    if n_pad:
        # Dummy rows are all padding (-1): zero sum, eps-guarded norm -> zeros.
        idx = jnp.concatenate(
            [idx, jnp.full((n_pad, L), -1, dtype=jnp.int32)], axis=0)

    embs = starspace_embed(idx, emb_padded, d_embed, tile_n=tile_n)

    D = d_embed
    l_batch = embs[0:B].reshape(B, 1, D)                  # .unsqueeze(1)
    r_batch = embs[B:2 * B].reshape(B, 1, D)              # .unsqueeze(1)
    neg_batch = embs[2 * B:2 * B + B * k_neg].reshape(B, k_neg, D)
    return l_batch, r_batch, neg_batch


if __name__ == "__main__":
    key = jax.random.PRNGKey(0)
    k_emb, k_tok, k_len = jax.random.split(key, 3)

    # Small synthetic setup consistent with the module:
    #   vocabulary size V, embedding dim D, B docs, S sentences/doc, L tokens.
    V, D = 512, 32
    B, S, L = 2, 4, 8
    k_neg = 3

    # nn.Embedding weight ~ N(0, 1); max_norm=20 renorm is a no-op at this scale.
    emb_table = jax.random.normal(k_emb, (V, D), dtype=jnp.float32)
    emb_padded = prepare_embedding_table(emb_table)       # pad + bf16 cast ONCE

    # Token ids per (doc, sentence) and variable sentence lengths (>= 1).
    doc_tokens = jax.random.randint(k_tok, (B, S, L), 0, V, dtype=jnp.int32)
    lengths = jax.random.randint(k_len, (B, S), 1, L + 1, dtype=jnp.int32)
    doc_mask = (jnp.arange(L)[None, None, :] < lengths[:, :, None]).astype(
        jnp.float32)

    l_batch, r_batch, neg_batch = starspace_forward(
        doc_tokens, doc_mask, emb_padded, D, k_neg=k_neg)
    jax.block_until_ready((l_batch, r_batch, neg_batch))

    # Pure-JAX reference for embed_doc: sum of gathered embeddings, normalized.
    def ref_embed(idx_row, msk_row):
        summed = jnp.sum(emb_table[idx_row] * msk_row[:, None], axis=0)
        return summed / jnp.linalg.norm(summed)

    assert l_batch.shape == (B, 1, D)
    assert r_batch.shape == (B, 1, D)
    assert neg_batch.shape == (B, k_neg, D)

    tol = dict(atol=2e-2, rtol=2e-2)
    for i in range(B):
        sb = 1 if S > 1 else 0
        assert jnp.allclose(l_batch[i, 0],
                            ref_embed(doc_tokens[i, 0], doc_mask[i, 0]), **tol)
        assert jnp.allclose(r_batch[i, 0],
                            ref_embed(doc_tokens[i, sb], doc_mask[i, sb]), **tol)
    for i in range(B):
        for j in range(k_neg):
            d = (i + 1 + (j % max(B - 1, 1))) % B
            s = j % S
            assert jnp.allclose(neg_batch[i, j],
                                ref_embed(doc_tokens[d, s], doc_mask[d, s]),
                                **tol)

    finite = (jnp.all(jnp.isfinite(l_batch)) & jnp.all(jnp.isfinite(r_batch))
              & jnp.all(jnp.isfinite(neg_batch)))
    assert bool(finite)
    assert jnp.allclose(jnp.linalg.norm(neg_batch, axis=-1), 1.0, atol=1e-3)

    print("KERNEL_OK")
</pallas_src>

<mosaic_0001>
module attributes {stable_mosaic.version = 11 : i64} {
  func.func @_resident_embed_kernel(%arg0: i32, %arg1: memref<8x8xi32, #tpu.memory_space<vmem>>, %arg2: memref<1024x128xbf16, #tpu.memory_space<vmem>>, %arg3: memref<8x128xf32, #tpu.memory_space<vmem>>) attributes {dimension_semantics = [#tpu.dimension_semantics<parallel>], iteration_bounds = array<i64: 2>, scalar_prefetch = 0 : i64, scratch_operands = 0 : i64, tpu.core_type = #tpu.core_type<tc>, window_params = [{transform_indices = @transform_0, window_bounds = array<i64: 8, 8>}, {pipeline_mode = #tpu.pipeline_mode<synchronous>, transform_indices = @transform_1, window_bounds = array<i64: 1024, 128>}, {transform_indices = @transform_2, window_bounds = array<i64: 8, 128>}]} {
    %c0 = arith.constant 0 : index
    %c0_0 = arith.constant 0 : index
    %0 = vector.load %arg1[%c0, %c0_0] : memref<8x8xi32, #tpu.memory_space<vmem>>, vector<8x8xi32>
    %cst = arith.constant 0.000000e+00 : f32
    %1 = vector.broadcast %cst : f32 to vector<8x128xf32>
    %c0_1 = arith.constant 0 : index
    %c0_2 = arith.constant 0 : index
    %2 = vector.load %arg2[%c0_1, %c0_2] : memref<1024x128xbf16, #tpu.memory_space<vmem>>, vector<1024x128xbf16>
    %3 = tpu.iota {dimensions = array<i32: 1>} : vector<8x1024xi32>
    %c0_i32 = arith.constant 0 : i32
    %4 = vector.broadcast %c0_i32 : i32 to vector<8x1024xi32>
    %5 = arith.addi %3, %4 : vector<8x1024xi32>
    %c0_i32_3 = arith.constant 0 : i32
    %6 = vector.broadcast %c0_i32_3 : i32 to vector<8x1024xi32>
    %7 = vector.extract_strided_slice %0 {offsets = [0, 0], sizes = [8, 1], strides = [1, 1]} : vector<8x8xi32> to vector<8x1xi32>
    %8 = vector.broadcast %7 : vector<8x1xi32> to vector<8x1024xi32>
    %9 = arith.cmpi eq, %5, %8 : vector<8x1024xi32>
    %10 = arith.extui %9 : vector<8x1024xi1> to vector<8x1024xi32>
    %11 = arith.addi %6, %10 : vector<8x1024xi32>
    %12 = vector.extract_strided_slice %0 {offsets = [0, 1], sizes = [8, 1], strides = [1, 1]} : vector<8x8xi32> to vector<8x1xi32>
    %13 = vector.broadcast %12 : vector<8x1xi32> to vector<8x1024xi32>
    %14 = arith.cmpi eq, %5, %13 : vector<8x1024xi32>
    %15 = arith.extui %14 : vector<8x1024xi1> to vector<8x1024xi32>
    %16 = arith.addi %11, %15 : vector<8x1024xi32>
    %17 = vector.extract_strided_slice %0 {offsets = [0, 2], sizes = [8, 1], strides = [1, 1]} : vector<8x8xi32> to vector<8x1xi32>
    %18 = vector.broadcast %17 : vector<8x1xi32> to vector<8x1024xi32>
    %19 = arith.cmpi eq, %5, %18 : vector<8x1024xi32>
    %20 = arith.extui %19 : vector<8x1024xi1> to vector<8x1024xi32>
    %21 = arith.addi %16, %20 : vector<8x1024xi32>
    %22 = vector.extract_strided_slice %0 {offsets = [0, 3], sizes = [8, 1], strides = [1, 1]} : vector<8x8xi32> to vector<8x1xi32>
    %23 = vector.broadcast %22 : vector<8x1xi32> to vector<8x1024xi32>
    %24 = arith.cmpi eq, %5, %23 : vector<8x1024xi32>
    %25 = arith.extui %24 : vector<8x1024xi1> to vector<8x1024xi32>
    %26 = arith.addi %21, %25 : vector<8x1024xi32>
    %27 = vector.extract_strided_slice %0 {offsets = [0, 4], sizes = [8, 1], strides = [1, 1]} : vector<8x8xi32> to vector<8x1xi32>
    %28 = vector.broadcast %27 : vector<8x1xi32> to vector<8x1024xi32>
    %29 = arith.cmpi eq, %5, %28 : vector<8x1024xi32>
    %30 = arith.extui %29 : vector<8x1024xi1> to vector<8x1024xi32>
    %31 = arith.addi %26, %30 : vector<8x1024xi32>
    %32 = vector.extract_strided_slice %0 {offsets = [0, 5], sizes = [8, 1], strides = [1, 1]} : vector<8x8xi32> to vector<8x1xi32>
    %33 = vector.broadcast %32 : vector<8x1xi32> to vector<8x1024xi32>
    %34 = arith.cmpi eq, %5, %33 : vector<8x1024xi32>
    %35 = arith.extui %34 : vector<8x1024xi1> to vector<8x1024xi32>
    %36 = arith.addi %31, %35 : vector<8x1024xi32>
    %37 = vector.extract_strided_slice %0 {offsets = [0, 6], sizes = [8, 1], strides = [1, 1]} : vector<8x8xi32> to vector<8x1xi32>
    %38 = vector.broadcast %37 : vector<8x1xi32> to vector<8x1024xi32>
    %39 = arith.cmpi eq, %5, %38 : vector<8x1024xi32>
    %40 = arith.extui %39 : vector<8x1024xi1> to vector<8x1024xi32>
    %41 = arith.addi %36, %40 : vector<8x1024xi32>
    %42 = vector.extract_strided_slice %0 {offsets = [0, 7], sizes = [8, 1], strides = [1, 1]} : vector<8x8xi32> to vector<8x1xi32>
    %43 = vector.broadcast %42 : vector<8x1xi32> to vector<8x1024xi32>
    %44 = arith.cmpi eq, %5, %43 : vector<8x1024xi32>
    %45 = arith.extui %44 : vector<8x1024xi1> to vector<8x1024xi32>
    %46 = arith.addi %41, %45 : vector<8x1024xi32>
    %47 = arith.sitofp %46 : vector<8x1024xi32> to vector<8x1024xbf16>
    %cst_4 = arith.constant dense<0.000000e+00> : vector<8x128xf32>
    %48 = tpu.matmul %47, %2, %cst_4 {dimension_numbers = #tpu.dot_dimension_numbers<[1], [0], [0], [1], [0, 0, 1, 1], [], []>} : vector<8x1024xbf16>, vector<1024x128xbf16>, vector<8x128xf32> -> vector<8x128xf32>
    %49 = arith.addf %1, %48 : vector<8x128xf32>
    %50 = arith.mulf %49, %49 : vector<8x128xf32>
    %cst_5 = arith.constant dense<0.000000e+00> : vector<8xf32>
    %51 = vector.multi_reduction <add>, %50, %cst_5 [1] : vector<8x128xf32> to vector<8xf32>
    %52 = vector.shape_cast %51 : vector<8xf32> to vector<8x1xf32>
    %cst_6 = arith.constant 9.99999996E-13 : f32
    %53 = vector.broadcast %cst_6 : f32 to vector<8x1xf32>
    %54 = arith.maximumf %52, %53 : vector<8x1xf32>
    %55 = math.rsqrt %54 : vector<8x1xf32>
    %56 = vector.broadcast %55 : vector<8x1xf32> to vector<8x128xf32>
    %57 = arith.mulf %49, %56 : vector<8x128xf32>
    %c0_7 = arith.constant 0 : index
    %c0_8 = arith.constant 0 : index
    %58 = vector.load %arg3[%c0_7, %c0_8] : memref<8x128xf32, #tpu.memory_space<vmem>>, vector<8x128xf32>
    tpu.vector_store %arg3[%c0_7, %c0_8], %57 {strides = array<i32>} : memref<8x128xf32, #tpu.memory_space<vmem>>, vector<8x128xf32>,
    return
  }
  func.func @transform_0(%arg0: i32) -> (i32, i32) {
    %c0_i32 = arith.constant 0 : i32
    %c0_i32_0 = arith.constant 0 : i32
    return %arg0, %c0_i32 : i32, i32
  }
  func.func @transform_1(%arg0: i32) -> (i32, i32) {
    %c0_i32 = arith.constant 0 : i32
    %c0_i32_0 = arith.constant 0 : i32
    %c0_i32_1 = arith.constant 0 : i32
    return %c0_i32, %c0_i32_0 : i32, i32
  }
  func.func @transform_2(%arg0: i32) -> (i32, i32) {
    %c0_i32 = arith.constant 0 : i32
    %c0_i32_0 = arith.constant 0 : i32
    return %arg0, %c0_i32 : i32, i32
  }
}

</mosaic_0001>

<bundles_post_ra>
// kernel: tpu_custom_call.1
= control target key start
LH: loop header
LB: loop body
LE: loop exit
PB: predicated region body
PF: predicated region fallthrough
CT: control target
= control target key end

     0   :  { %7 = vsyncpa [#allocation3], 0  ;;  %s1990_s0 = inlined_call_operand.vmem [shape: s32[16,8], index: 0, kind: input, shape index: {}]   ;;  %s1991_s1 = inlined_call_operand.hbm [shape: bf16[1024,128], index: 1, kind: input, shape index: {}]   ;;  %s1992_s2 = inlined_call_operand.hbm [shape: f32[16,128], index: 2, kind: output, shape index: {}]  }
   0x1   :  { %8 = vsyncpa [#allocation4], 0 }
   0x2   :  { %10 = vsyncpa [#allocation4 + $0x1], 0  ;;  %s1575_s9 = smov 0   ;;  %s1577_s10 = smov 0  }
   0x3   :  { %s1579_s11 = smov 0   ;;  %s1581_s12 = smov 0  }
   0x4 LB: > { %s1596_s13 = sadd.s32 4294967295, %s1546_s12   ;;  %s1153_s14 = sadd.s32 4294967294, %s1546_s12   ;;  %s1546_s12 = sphi %s1581_s12, %s2008_s12   ;;  %s1542_s11 = sphi %s1579_s11, %s2007_s11   ;;  %s1538_s10 = sphi %s1577_s10, %s2006_s10   ;;  %s1534_s9 = sphi %s1575_s9, %s2005_s9  }
   0x5   : > { %s1600_s15 = sadd.s32 1, %s1546_s12   ;;  %s70_s16 = sadd.s32 1, %s1542_s11 }
   0x6   : > { %s67_s17 = ssub.s32 %s1546_s12, %s1600_s15  ;;  %p80_p0 = scmp.ne.s32.totalorder %s1542_s11, %s1538_s10 }
   0x7   : > { %p68_p1 = scmp.eq.s32.totalorder %s67_s17, 0  ;;  %p81_p2 = scmp.eq.s32.totalorder %s1596_s13, 1 }
   0x8   : > { %p86_p3 = scmp.ne.s32.totalorder %s1538_s10, %s1534_s9  ;;  %p87_p4 = scmp.eq.s32.totalorder %s1153_s14, 1 }
   0x9   : > { %s1611_s18 = scalar_select %p68_p1, %s1542_s11, %s70_s16  }
   0xa   : > { %p1613_p5 = por %p81_p2, %p80_p0  ;;  %p1617_p6 = por %p87_p4, %p86_p3 }
   0xb   : > { %p1154_p7 = scmp.ge.s32.totalorder %s1546_s12, 1  ;;  %p94_p8 = scmp.lt.s32.totalorder %s1546_s12, 3 }
   0xc   : > { %s1996_s19 = scalar_select %p1613_p5, 1, 0 }
   0xd   : > { %s1997_s20 = scalar_select %p1617_p6, 1, 0 }
   0xe   : > { %p1993_p9 = scmp.eq.s32.totalorder %s1596_s13, 0  ;;  %p1624_p10 = pnand %p1154_p7, %p94_p8 }
   0xf   : > { %s1548_s22 = smov [#allocation2]   ;;  %s1452_s27 = scalar_lea.hbm %s1991_s1, 8192 }
  0x10   : > { %s1998_s21 = scalar_select %p1624_p10, 1, 0 }
  0x11   : > { %s106_s23 = sshll.u32 %s1548_s22, 4  ;;  %p1323_p11 = pneg %p1624_p10  ;;  %s107_s23 = int_to_ptr.vmem [resolvable:$true] %s106_s23 }
  0x12   : > { %p1453_p13 = scmp.ne.s32.totalorder %s1991_s1, %s1452_s27  ;;  %p1459_p3 = scmp.lt.u32.totalorder %s1452_s27, %s1991_s1 }
  0x13   : > { %p1632_p12 = pnand %p1993_p9, %p1323_p11 }
  0x15   : > { %p1454_p0 = pneg %p1632_p12 }
  0x17   : > { %p1455_p1 = pnand %p1454_p0, %p1453_p13 }
  0x19   : > { %p1456_p2 = pneg %p1455_p1 }
  0x1b   : > { %p1461_p4 = pnand %p1459_p3, %p1456_p2 }
  0x1d   : > { %1464 = shalt.err (!%p1461_p4)
}
  0x1e   : > { %s1465_s4 = scalar_lea.vmem %s107_s23, 8192  ;;  %p1473_p9 = scmp.lt.s32.totalorder %s107_s23, %s107_s23 }
  0x1f   : > { %p1466_p7 = scmp.ne.s32.totalorder %s107_s23, %s1465_s4  ;;  %p1474_p6 = scmp.lt.s32.totalorder %s1465_s4, %s1465_s4 }
  0x21   : > { %p1468_p8 = pnand %p1466_p7, %p1454_p0  ;;  %p1475_p5 = por %p1474_p6, %p1473_p9 }
  0x23   : > { %p1469_p11 = pneg %p1468_p8 }
  0x25   : > { %p1476_p10 = pnand %p1475_p5, %p1469_p11 }
  0x27   : > { %1479 = shalt.err (!%p1476_p10)
}
  0x28   : > { %s1549_s5 = smov 64   ;;  %s1550_s6 = smov 4  }
  0x29   : > { %1326 = dma.hbm_to_vmem [thread:$0]  (!%p1632_p12), %s1991_s1, 8192, %s107_s23, [#allocation3], %s1549_s5, %s1549_s5, %s1550_s6  }
  0x2a   : > { %p2000_p13 = scmp.ne.s32.totalorder %s1998_s21, 0 }
  0x2b   : > { %p2001_p1 = scmp.eq.s32.totalorder (!%p2000_p13), %s1596_s13, 0 }
  0x2c   : > { %129 = sbr.rel (%p2000_p13) target bundleno = 645 (0x285), region = 28 }
  0x33   : > { %1525 = dma.done.wait (%p2001_p1), [#allocation3], 8192   ;;  %p2002_p0 = pmov %p2001_p1 }
  0x34   : > { %p150_p5 = scmp.lt.s32.totalorder %s1596_s13, 1  ;;  %v1551_v0 = vmov 2   ;;  %v1552_v1 = vmov 0   ;;  %v1386_v3 = vld [vmem:[#allocation2 + $0x40] sm:$0xff]   ;;  %v1553_v7 = vmov 3   ;;  %v1554_v8 = vmov 1  }
  0x35   : > { %1527 = vsyncadd (%p2002_p0), [#allocation3], 4294959104  ;;  %1379 = vset.pattern.permute.xlu1 %v1551_v0  ;;  %1377 = vset.pattern.permute.xlu0 %v1552_v1  ;;  %v1387_v4 = vld [vmem:[#allocation2 + $0xc0] sm:$0xff]   ;;  %v1390_v9 = vld [vmem:[#allocation2 + $0x48] sm:$0xff]   ;;  %v1555_v14 = vmov 4   ;;  %v1556_v15 = vmov 5   ;;  %v284_v43 = vlaneseq }
  0x36   : > { %s151_s14 = scalar_select %p150_p5, %s1596_s13, 1  ;;  %1229 = vmatprep.subr.bf16.mxu0 %v1386_v3  ;;  %v1388_v5 = vld [vmem:[#allocation2] sm:$0xff]   ;;  %1251 = vmatprep.subr.bf16.mxu1 %v1387_v4  ;;  %v1391_v10 = vld [vmem:[#allocation2 + $0xc8] sm:$0xff]   ;;  %v1394_v13 = vld [vmem:[#allocation2 + $0x50] sm:$0xff]   ;;  %v1557_v21 = vmov 6   ;;  %v1558_v23 = vmov 7  }
  0x37   : > { %v1389_v6 = vld [vmem:[#allocation2 + $0x80] sm:$0xff]   ;;  %1230 = vmatpush3.bf16.msra.mxu0 %v1388_v5  ;;  %v1392_v11 = vld [vmem:[#allocation2 + $0x8] sm:$0xff]   ;;  %v1395_v16 = vld [vmem:[#allocation2 + $0xd0] sm:$0xff]   ;;  %v1664_v44 = vand.u32 127, %v284_v43  ;;  %s147_s23 = sand.u32 1, %s1538_s10   ;;  %s1226_s25 = sshll.u32 %s1596_s13, 7 }
  0x38   : > { %s1160_s16 = sshll.u32 %s151_s14, 3  ;;  %1252 = vmatpush3.bf16.msra.mxu1 %v1389_v6  ;;  %1231 = vmatprep.subr.bf16.mxu0 %v1390_v9  ;;  %v1393_v12 = vld [vmem:[#allocation2 + $0x88] sm:$0xff]   ;;  %v1396_v17 = vld [vmem:[#allocation2 + $0x10] sm:$0xff]   ;;  %v1398_v19 = vld [vmem:[#allocation2 + $0x58] sm:$0xff]   ;;  %s1159_s24 = sshll.u32 %s147_s23, 3 }
  0x39   : > { %s153_s21 = scalar_lea.vmem %s1990_s0, %s1160_s16  ;;  %1253 = vmatprep.subr.bf16.mxu1 %v1391_v10  ;;  %v1397_v18 = vld [vmem:[#allocation2 + $0x90] sm:$0xff]   ;;  %v1399_v20 = vld [vmem:[#allocation2 + $0xd8] sm:$0xff]   ;;  %v1402_v25 = vld [vmem:[#allocation2 + $0x60] sm:$0xff]   ;;  %v1667_v45 = vadd.s32 128, %v1664_v44  ;;  %v1670_v46 = vadd.s32 384, %v1664_v44  ;;  %v1673_v47 = vadd.s32 512, %v1664_v44  ;;  %s1948_s30 = scalar_lea.hbm %s1992_s2, %s1226_s25 }
  0x3a   : > { %v155_v2 = vld [vmem:[%s153_s21] sm:$0xff]  ;;  %v1400_v22 = vld [vmem:[#allocation2 + $0x18] sm:$0xff]   ;;  %v1406_v29 = vld [vmem:[#allocation2 + $0x68] sm:$0xff]   ;;  %v1686_v50 = vadd.s32 768, %v1664_v44  ;;  %v1693_v51 = vadd.s32 256, %v1664_v44  ;;  %v1700_v52 = vadd.s32 640, %v1664_v44 }
  0x3b   : > { %340 = vperm.xlu1 %1379, %v155_v2   ;;  %294 = vperm.xlu0 %1377, %v155_v2   ;;  %v1401_v24 = vld [vmem:[#allocation2 + $0x98] sm:$0xff]   ;;  %v1403_v26 = vld [vmem:[#allocation2 + $0xe0] sm:$0xff]   ;;  %v1407_v30 = vld [vmem:[#allocation2 + $0xe8] sm:$0xff]   ;;  %v1703_v53 = vadd.s32 896, %v1664_v44  ;;  %s149_s26 = scalar_lea.vmem [#allocation5], %s1159_s24  ;;  %s1069_s3 = scalar_lea.sflag [#allocation4], %s147_s23 }
  0x3c   : > { %1232 = vmatpush3.bf16.msra.mxu0 %v1392_v11  ;;  %1254 = vmatpush3.bf16.msra.mxu1 %v1393_v12  ;;  %v1404_v27 = vld [vmem:[#allocation2 + $0x20] sm:$0xff]   ;;  %v1408_v31 = vld [vmem:[#allocation2 + $0x28] sm:$0xff]   ;;  %v1410_v33 = vld [vmem:[#allocation2 + $0x70] sm:$0xff]   ;;  %s1082_s27 = sshll.u32 %s149_s26, 4  ;;  %p2003_p9 = scmp.ne.s32.totalorder %s1996_s19, 0  ;;  %s1950_s27 = int_to_ptr.vmem [resolvable:$true] %s1082_s27 }
  0x3d   : > { %1233 = vmatprep.subr.bf16.mxu0 %v1394_v13  ;;  %1255 = vmatprep.subr.bf16.mxu1 %v1395_v16  ;;  %v1405_v28 = vld [vmem:[#allocation2 + $0xa0] sm:$0xff]   ;;  %v1409_v32 = vld [vmem:[#allocation2 + $0xa8] sm:$0xff]   ;;  %v1411_v34 = vld [vmem:[#allocation2 + $0xf0] sm:$0xff]   ;;  %s1480_s4 = scalar_lea.vmem %s1950_s27, 128  ;;  %s1559_s13 = smov [#allocation5]  }
  0x3e   : > { %v1412_v35 = vld [vmem:[#allocation2 + $0x30] sm:$0xff]   ;;  %v1414_v37 = vld [vmem:[#allocation2 + $0x78] sm:$0xff]   ;;  %v1418_v41 = vld [vmem:[#allocation2 + $0x140] sm:$0xff]   ;;  %p1481_p6 = scmp.ne.s32.totalorder %s1950_s27, %s1480_s4  ;;  %s1484_s5 = sshll.u32 %s1559_s13, 4  ;;  %s1485_s5 = int_to_ptr.vmem [resolvable:$false] %s1484_s5 }
  0x3f   : > { %1380 = vset.pattern.permute.xlu1 %v1553_v7  ;;  %1378 = vset.pattern.permute.xlu0 %v1554_v8  ;;  %v1413_v36 = vld [vmem:[#allocation2 + $0xb0] sm:$0xff]   ;;  %v1415_v38 = vld [vmem:[#allocation2 + $0xf8] sm:$0xff]   ;;  %v1419_v42 = vld [vmem:[#allocation2 + $0x1c0] sm:$0xff]   ;;  %s1486_s6 = scalar_lea.vmem %s1485_s5, 256  ;;  %p1487_p2 = scmp.lt.s32.totalorder %s1950_s27, %s1485_s5 }
  0x40   : > { %367 = vperm.xlu1 %1380, %v155_v2   ;;  %313 = vperm.xlu0 %1378, %v155_v2   ;;  %v1416_v39 = vld [vmem:[#allocation2 + $0x38] sm:$0xff]   ;;  %p1482_p10 = pnand %p1481_p6, %p2003_p9  ;;  %p1488_p3 = scmp.lt.s32.totalorder %s1486_s6, %s1480_s4 }
  0x41   : > { %1234 = vmatpush3.bf16.msra.mxu0 %v1396_v17  ;;  %1256 = vmatpush3.bf16.msra.mxu1 %v1397_v18  ;;  %v1417_v40 = vld [vmem:[#allocation2 + $0xb8] sm:$0xff]  }
  0x42   : > { %1235 = vmatprep.subr.bf16.mxu0 %v1398_v19  ;;  %1257 = vmatprep.subr.bf16.mxu1 %v1399_v20  ;;  %p1483_p12 = pneg %p1482_p10  ;;  %p1489_p4 = por %p1488_p3, %p1487_p2 }
  0x44   : > { %1381 = vset.pattern.permute.xlu1 %v1555_v14  ;;  %1382 = vset.pattern.permute.xlu0 %v1556_v15  ;;  %p1490_p7 = pnand %p1489_p4, %p1483_p12 }
  0x45   : > { %394 = vperm.xlu1 %1381, %v155_v2   ;;  %421 = vperm.xlu0 %1382, %v155_v2  }
  0x46   : > { %1236 = vmatpush3.bf16.msra.mxu0 %v1400_v22  ;;  %1258 = vmatpush3.bf16.msra.mxu1 %v1401_v24 }
  0x47   : > { %1237 = vmatprep.subr.bf16.mxu0 %v1402_v25  ;;  %1259 = vmatprep.subr.bf16.mxu1 %v1403_v26 }
  0x49   : > { %1383 = vset.pattern.permute.xlu1 %v1557_v21  ;;  %1385 = vset.pattern.permute.xlu0 %v1558_v23 }
  0x4a   : > { %448 = vperm.xlu1 %1383, %v155_v2   ;;  %1238 = vmatpush3.bf16.msra.mxu0 %v1404_v27 }
  0x4b   : > { %1260 = vmatpush3.bf16.msra.mxu1 %v1405_v28  ;;  %1239 = vmatprep.subr.bf16.mxu0 %v1406_v29 }
  0x4c   : > { %1261 = vmatprep.subr.bf16.mxu1 %v1407_v30 }
  0x4e   : > { %1384 = vset.pattern.permute.xlu1 %v1558_v23  ;;  %1240 = vmatpush3.bf16.msra.mxu0 %v1408_v31 }
  0x4f   : > { %475 = vperm.xlu1 %1384, %v155_v2   ;;  %1262 = vmatpush3.bf16.msra.mxu1 %v1409_v32 }
  0x50   : > { %1241 = vmatprep.subr.bf16.mxu0 %v1410_v33  ;;  %1263 = vmatprep.subr.bf16.mxu1 %v1411_v34 }
  0x52   : > { %1242 = vmatpush3.bf16.msra.mxu0 %v1412_v35 }
  0x53   : > { %1264 = vmatpush3.bf16.msra.mxu1 %v1413_v36  ;;  %1243 = vmatprep.subr.bf16.mxu0 %v1414_v37 }
  0x54   : > { %1265 = vmatprep.subr.bf16.mxu1 %v1415_v38 }
  0x56   : > { %1244 = vmatpush3.bf16.msra.mxu0 %v1416_v39 }
  0x57   : > { %1266 = vmatpush3.bf16.msra.mxu1 %v1417_v40  ;;  %1273 = vmatprep.subr.bf16.mxu0 %v1418_v41 }
  0x58   : > { %1295 = vmatprep.subr.bf16.mxu1 %v1419_v42 }
  0xba   : > { %v1675_v48 = vpop.permute.xlu1 %340  ;;  %v1677_v49 = vpop.permute.xlu0 %294 }
  0xbb   : > { %vm300_vm0 = vcmp.eq.s32.totalorder %v1673_v47, %v1677_v49  ;;  %vm297_vm1 = vcmp.eq.s32.totalorder %v1667_v45, %v1677_v49  ;;  %vm343_vm2 = vcmp.eq.s32.totalorder %v1667_v45, %v1675_v48  ;;  %vm299_vm3 = vcmp.eq.s32.totalorder %v1670_v46, %v1677_v49 }
  0xbc   : > { %vm345_vm4 = vcmp.eq.s32.totalorder %v1670_v46, %v1675_v48  ;;  %vm296_vm5 = vcmp.eq.s32.totalorder %v1664_v44, %v1677_v49  ;;  %vm342_vm6 = vcmp.eq.s32.totalorder %v1664_v44, %v1675_v48  ;;  %v1706_v54 = vsel %vm300_vm0, 1, %v1552_v1 }
  0xbd   : > { %v305_v57 = vsel %vm297_vm1, 1, %v1552_v1  ;;  %v351_v58 = vsel %vm343_vm2, 1, %v1552_v1  ;;  %v307_v59 = vsel %vm299_vm3, 1, %v1552_v1  ;;  %v353_v60 = vsel %vm345_vm4, 1, %v1552_v1 }
  0xbe   : > { %v304_v61 = vsel %vm296_vm5, 1, %v1552_v1  ;;  %v350_v0 = vsel %vm342_vm6, 1, %v1552_v1  ;;  %vm298_vm9 = vcmp.eq.s32.totalorder %v1693_v51, %v1677_v49  ;;  %vm344_vm13 = vcmp.eq.s32.totalorder %v1693_v51, %v1675_v48 }
  0xbf   : > { %v1708_v55 = vpop.permute.xlu1 %367  ;;  %v1710_v56 = vpop.permute.xlu0 %313  ;;  %v306_v25 = vsel %vm298_vm9, 1, %v1552_v1  ;;  %vm302_vm9 = vcmp.eq.s32.totalorder %v1686_v50, %v1677_v49  ;;  %v352_v37 = vsel %vm344_vm13, 1, %v1552_v1 }
  0xc0   : > { %vm316_vm7 = vcmp.eq.s32.totalorder %v1667_v45, %v1710_v56  ;;  %vm370_vm8 = vcmp.eq.s32.totalorder %v1667_v45, %v1708_v55  ;;  %vm318_vm10 = vcmp.eq.s32.totalorder %v1670_v46, %v1710_v56  ;;  %vm372_vm11 = vcmp.eq.s32.totalorder %v1670_v46, %v1708_v55 }
  0xc1   : > { %v324_v62 = vsel %vm316_vm7, 1, %v1552_v1  ;;  %v378_v63 = vsel %vm370_vm8, 1, %v1552_v1  ;;  %vm315_vm12 = vcmp.eq.s32.totalorder %v1664_v44, %v1710_v56  ;;  %v326_v3 = vsel %vm318_vm10, 1, %v1552_v1 }
  0xc2   : > { %v332_v2 = vadd.s32 %v324_v62, %v305_v57  ;;  %v380_v4 = vsel %vm372_vm11, 1, %v1552_v1  ;;  %v323_v5 = vsel %vm315_vm12, 1, %v1552_v1  ;;  %vm369_vm14 = vcmp.eq.s32.totalorder %v1664_v44, %v1708_v55 }
  0xc3   : > { %v334_v9 = vadd.s32 %v326_v3, %v307_v59  ;;  %v331_v10 = vadd.s32 %v323_v5, %v304_v61  ;;  %v377_v11 = vsel %vm369_vm14, 1, %v1552_v1  ;;  %vm317_vm5 = vcmp.eq.s32.totalorder %v1693_v51, %v1710_v56 }
  0xc4   : > { %v1739_v6 = vpop.permute.xlu1 %394  ;;  %v1741_v7 = vpop.permute.xlu0 %421  ;;  %v359_v8 = vadd.s32 %v351_v58, %v332_v2  ;;  %v325_v34 = vsel %vm317_vm5, 1, %v1552_v1  ;;  %vm319_vm10 = vcmp.eq.s32.totalorder %v1673_v47, %v1710_v56  ;;  %vm371_vm11 = vcmp.eq.s32.totalorder %v1693_v51, %v1708_v55 }
  0xc5   : > { %vm397_vm15 = vcmp.eq.s32.totalorder %v1667_v45, %v1739_v6  ;;  %vm424_vm0 = vcmp.eq.s32.totalorder %v1667_v45, %v1741_v7  ;;  %vm399_vm1 = vcmp.eq.s32.totalorder %v1670_v46, %v1739_v6  ;;  %vm426_vm2 = vcmp.eq.s32.totalorder %v1670_v46, %v1741_v7 }
  0xc6   : > { %v386_v12 = vadd.s32 %v378_v63, %v359_v8  ;;  %v405_v13 = vsel %vm397_vm15, 1, %v1552_v1  ;;  %v432_v14 = vsel %vm424_vm0, 1, %v1552_v1  ;;  %v361_v15 = vadd.s32 %v353_v60, %v334_v9  ;;  %v1420_v9 = vld [vmem:[#allocation2 + $0x100] sm:$0xff]  }
  0xc7   : > { %v407_v16 = vsel %vm399_vm1, 1, %v1552_v1  ;;  %v434_v17 = vsel %vm426_vm2, 1, %v1552_v1  ;;  %v358_v18 = vadd.s32 %v350_v0, %v331_v10  ;;  %vm396_vm3 = vcmp.eq.s32.totalorder %v1664_v44, %v1739_v6 }
  0xc8   : > { %v413_v19 = vadd.s32 %v405_v13, %v386_v12  ;;  %v388_v20 = vadd.s32 %v380_v4, %v361_v15  ;;  %v404_v21 = vsel %vm396_vm3, 1, %v1552_v1  ;;  %vm423_vm4 = vcmp.eq.s32.totalorder %v1664_v44, %v1741_v7  ;;  %v1422_v13 = vld [vmem:[#allocation2 + $0x148] sm:$0xff]  }
  0xc9   : > { %v1761_v22 = vpop.permute.xlu1 %448  ;;  %v385_v23 = vadd.s32 %v377_v11, %v358_v18  ;;  %v431_v24 = vsel %vm423_vm4, 1, %v1552_v1  ;;  %v333_v36 = vadd.s32 %v325_v34, %v306_v25  ;;  %v379_v40 = vsel %vm371_vm11, 1, %v1552_v1  ;;  %v1428_v34 = vld [vmem:[#allocation2 + $0x110] sm:$0xff]  }
  0xca   : > { %v440_v26 = vadd.s32 %v432_v14, %v413_v19  ;;  %vm451_vm6 = vcmp.eq.s32.totalorder %v1667_v45, %v1761_v22  ;;  %v415_v27 = vadd.s32 %v407_v16, %v388_v20  ;;  %vm453_vm7 = vcmp.eq.s32.totalorder %v1670_v46, %v1761_v22 }
  0xcb   : > { %v459_v28 = vsel %vm451_vm6, 1, %v1552_v1  ;;  %v461_v29 = vsel %vm453_vm7, 1, %v1552_v1  ;;  %v412_v30 = vadd.s32 %v404_v21, %v385_v23  ;;  %vm450_vm8 = vcmp.eq.s32.totalorder %v1664_v44, %v1761_v22 }
  0xcc   : > { %v467_v31 = vadd.s32 %v459_v28, %v440_v26  ;;  %v442_v32 = vadd.s32 %v434_v17, %v415_v27  ;;  %v458_v33 = vsel %vm450_vm8, 1, %v1552_v1  ;;  %vm398_vm12 = vcmp.eq.s32.totalorder %v1693_v51, %v1739_v6  ;;  %v1426_v26 = vld [vmem:[#allocation2 + $0x150] sm:$0xff]  }
  0xcd   : > { %v439_v35 = vadd.s32 %v431_v24, %v412_v30  ;;  %vm425_vm14 = vcmp.eq.s32.totalorder %v1693_v51, %v1741_v7  ;;  %v360_v58 = vadd.s32 %v352_v37, %v333_v36  ;;  %v406_v62 = vsel %vm398_vm12, 1, %v1552_v1  ;;  %v1424_v24 = vld [vmem:[#allocation2 + $0x108] sm:$0xff]  }
  0xce   : > { %v1790_v38 = vpop.permute.xlu1 %475  ;;  %v469_v39 = vadd.s32 %v461_v29, %v442_v32  ;;  %vm321_vm1 = vcmp.eq.s32.totalorder %v1686_v50, %v1710_v56  ;;  %vm452_vm2 = vcmp.eq.s32.totalorder %v1693_v51, %v1761_v22  ;;  %vm301_vm4 = vcmp.eq.s32.totalorder %v1700_v52, %v1677_v49 }
  0xcf   : > { %vm478_vm15 = vcmp.eq.s32.totalorder %v1667_v45, %v1790_v38  ;;  %vm480_vm13 = vcmp.eq.s32.totalorder %v1670_v46, %v1790_v38  ;;  %v466_v41 = vadd.s32 %v458_v33, %v439_v35  ;;  %vm477_vm0 = vcmp.eq.s32.totalorder %v1664_v44, %v1790_v38 }
  0xd0   : > { %v486_v42 = vsel %vm478_vm15, 1, %v1552_v1  ;;  %v488_v43 = vsel %vm480_vm13, 1, %v1552_v1  ;;  %v485_v57 = vsel %vm477_vm0, 1, %v1552_v1  ;;  %v387_v45 = vadd.s32 %v379_v40, %v360_v58  ;;  %v1430_v40 = vld [vmem:[#allocation2 + $0x158] sm:$0xff]  }
  0xd1   : > { %v494_v59 = vadd.s32 %v486_v42, %v467_v31  ;;  %v496_v60 = vadd.s32 %v488_v43, %v469_v39  ;;  %v493_v61 = vadd.s32 %v485_v57, %v466_v41  ;;  %v433_v46 = vsel %vm425_vm14, 1, %v1552_v1  ;;  %v1423_v39 = vld [vmem:[#allocation2 + $0x1c8] sm:$0xff]  }
  0xd2   : > { %vm479_vm3 = vcmp.eq.s32.totalorder %v1693_v51, %v1790_v38  ;;  %v414_v2 = vadd.s32 %v406_v62, %v387_v45  ;;  %v460_v3 = vsel %vm452_vm2, 1, %v1552_v1  ;;  %vm320_vm5 = vcmp.eq.s32.totalorder %v1700_v52, %v1710_v56  ;;  %v1432_v45 = vld [vmem:[#allocation2 + $0x118] sm:$0xff]  }
  0xd3   : > { %v502_v44 = vcvt.s32.f32 %v494_v59  ;;  %v504_v63 = vcvt.s32.f32 %v496_v60  ;;  %v501_v0 = vcvt.s32.f32 %v493_v61  ;;  %vm346_vm6 = vcmp.eq.s32.totalorder %v1673_v47, %v1675_v48 }
  0xd4   : > { %v309_v10 = vsel %vm301_vm4, 1, %v1552_v1  ;;  %v441_v11 = vadd.s32 %v433_v46, %v414_v2  ;;  %v328_v12 = vsel %vm320_vm5, 1, %v1552_v1  ;;  %vm347_vm7 = vcmp.eq.s32.totalorder %v1700_v52, %v1675_v48 }
  0xd5   : > { %v510_v4 = vpack.c.bf16 %v502_v44, %v502_v44  ;;  %v512_v5 = vpack.c.bf16 %v504_v63, %v504_v63  ;;  %v509_v8 = vpack.c.bf16 %v501_v0, %v501_v0  ;;  %vm374_vm8 = vcmp.eq.s32.totalorder %v1700_v52, %v1708_v55  ;;  %v1427_v44 = vld [vmem:[#allocation2 + $0x1d0] sm:$0xff]   ;;  %v1434_v63 = vld [vmem:[#allocation2 + $0x160] sm:$0xff]  }
  0xd6   : > { %v1831_v14 = vsel %vm302_vm9, 1, %v1552_v1  ;;  %v487_v15 = vsel %vm479_vm3, 1, %v1552_v1  ;;  %v336_v16 = vadd.s32 %v328_v12, %v309_v10  ;;  %vm401_vm11 = vcmp.eq.s32.totalorder %v1700_v52, %v1739_v6  ;;  %v1429_v12 = vld [vmem:[#allocation2 + $0x190] sm:$0xff]  }
  0xd7   : > { %933 = vmatprep.mubr.bf16.mxu0 %v510_v4  ;;  %973 = vmatprep.mubr.bf16.mxu1 %v512_v5  ;;  %v327_v17 = vsel %vm319_vm10, 1, %v1552_v1  ;;  %v1847_v18 = vsel %vm321_vm1, 1, %v1552_v1  ;;  %v468_v19 = vadd.s32 %v460_v3, %v441_v11  ;;  %v355_v51 = vsel %vm347_vm7, 1, %v1552_v1 }
  0xd8   : > { %934 = vmatmul.mubr.bf16.vlgmr.msra.gmra.mrb[0].mxu0 %v509_v8  ;;  %v363_v20 = vadd.s32 %v355_v51, %v336_v16  ;;  %v382_v21 = vsel %vm374_vm8, 1, %v1552_v1  ;;  %v409_v23 = vsel %vm401_vm11, 1, %v1552_v1  ;;  %vm428_vm9 = vcmp.eq.s32.totalorder %v1700_v52, %v1741_v7  ;;  %v1431_v16 = vld [vmem:[#allocation2 + $0x1d8] sm:$0xff]  }
  0xd9   : > { %1274 = vmatpush3.bf16.msra.mxu0 %v1420_v9  ;;  %vm348_vm10 = vcmp.eq.s32.totalorder %v1686_v50, %v1675_v48  ;;  %v495_v25 = vadd.s32 %v487_v15, %v468_v19  ;;  %vm455_vm12 = vcmp.eq.s32.totalorder %v1700_v52, %v1761_v22  ;;  %vm303_vm14 = vcmp.eq.s32.totalorder %v1703_v53, %v1677_v49  ;;  %v1421_v49 = vld [vmem:[#allocation2 + $0x180] sm:$0xff]  }
  0xda   : > { %vm322_vm15 = vcmp.eq.s32.totalorder %v1703_v53, %v1710_v56  ;;  %1275 = vmatprep.subr.bf16.mxu0 %v1422_v13  ;;  %v390_v27 = vadd.s32 %v382_v21, %v363_v20  ;;  %v311_v28 = vsel %vm303_vm14, 1, %v1552_v1  ;;  %vm349_vm13 = vcmp.eq.s32.totalorder %v1703_v53, %v1675_v48 }
  0xdb   : > { %v330_v29 = vsel %vm322_vm15, 1, %v1552_v1  ;;  %v503_v30 = vcvt.s32.f32 %v495_v25  ;;  %v436_v31 = vsel %vm428_vm9, 1, %v1552_v1  ;;  %vm376_vm0 = vcmp.eq.s32.totalorder %v1703_v53, %v1708_v55  ;;  %v1435_v25 = vld [vmem:[#allocation2 + $0x1e0] sm:$0xff]  }
  0xdc   : > { %v338_v32 = vadd.s32 %v330_v29, %v311_v28  ;;  %v417_v33 = vadd.s32 %v409_v23, %v390_v27  ;;  %vm482_vm1 = vcmp.eq.s32.totalorder %v1700_v52, %v1790_v38  ;;  %v357_v56 = vsel %vm349_vm13, 1, %v1552_v1  ;;  %v1442_v29 = vld [vmem:[#allocation2 + $0x170] sm:$0xff]  }
  0xdd   : > { %vm403_vm2 = vcmp.eq.s32.totalorder %v1703_v53, %v1739_v6  ;;  %1276 = vmatpush3.bf16.msra.mxu0 %v1424_v24  ;;  %v511_v35 = vpack.c.bf16 %v503_v30, %v503_v30  ;;  %v463_v36 = vsel %vm455_vm12, 1, %v1552_v1  ;;  %vm430_vm3 = vcmp.eq.s32.totalorder %v1703_v53, %v1741_v7 }
  0xde   : > { %v365_v37 = vadd.s32 %v357_v56, %v338_v32  ;;  %1277 = vmatprep.subr.bf16.mxu0 %v1426_v26  ;;  %v444_v41 = vadd.s32 %v436_v31, %v417_v33  ;;  %v384_v42 = vsel %vm376_vm0, 1, %v1552_v1  ;;  %v411_v43 = vsel %vm403_vm2, 1, %v1552_v1  ;;  %v1437_v31 = vld [vmem:[#allocation2 + $0x1a0] sm:$0xff]   ;;  %v1439_v33 = vld [vmem:[#allocation2 + $0x1e8] sm:$0xff]   ;;  %v1446_v56 = vld [vmem:[#allocation2 + $0x178] sm:$0xff]  }
  0xdf   : > { %v335_v57 = vadd.s32 %v327_v17, %v1706_v54  ;;  %974 = vmatmul.mubr.bf16.vlgmr.msra.gmra.mrb[0].mxu1 %v511_v35  ;;  %v490_v58 = vsel %vm482_vm1, 1, %v1552_v1  ;;  %vm457_vm4 = vcmp.eq.s32.totalorder %v1703_v53, %v1761_v22  ;;  %v354_v60 = vsel %vm346_vm6, 1, %v1552_v1  ;;  %v1425_v54 = vld [vmem:[#allocation2 + $0x188] sm:$0xff]   ;;  %v1436_v17 = vld [vmem:[#allocation2 + $0x120] sm:$0xff]  }
  0xe0   : > { %v392_v59 = vadd.s32 %v384_v42, %v365_v37  ;;  %1296 = vmatpush3.bf16.msra.mxu1 %v1421_v49  ;;  %v471_v61 = vadd.s32 %v463_v36, %v444_v41  ;;  %v438_v62 = vsel %vm430_vm3, 1, %v1552_v1  ;;  %vm373_vm5 = vcmp.eq.s32.totalorder %v1673_v47, %v1708_v55  ;;  %v1441_v36 = vld [vmem:[#allocation2 + $0x1a8] sm:$0xff]  }
  0xe1   : > { %1278 = vmatpush3.bf16.msra.mxu0 %v1428_v34  ;;  %v362_v46 = vadd.s32 %v354_v60, %v335_v57  ;;  %vm484_vm7 = vcmp.eq.s32.totalorder %v1703_v53, %v1790_v38  ;;  %1297 = vmatprep.subr.bf16.mxu1 %v1423_v39  ;;  %v381_v0 = vsel %vm373_vm5, 1, %v1552_v1  ;;  %vm400_vm6 = vcmp.eq.s32.totalorder %v1673_v47, %v1739_v6  ;;  %v1443_v39 = vld [vmem:[#allocation2 + $0x1f0] sm:$0xff]   ;;  %v1447_v57 = vld [vmem:[#allocation2 + $0x1f8] sm:$0xff]  }
  0xe2   : > { %v419_v52 = vadd.s32 %v411_v43, %v392_v59  ;;  %1279 = vmatprep.subr.bf16.mxu0 %v1430_v40  ;;  %v498_v2 = vadd.s32 %v490_v58, %v471_v61  ;;  %v465_v3 = vsel %vm457_vm4, 1, %v1552_v1  ;;  %v408_v5 = vsel %vm400_vm6, 1, %v1552_v1  ;;  %v1448_v40 = vld [vmem:[#allocation2 + $0x138] sm:$0xff]   ;;  %v1445_v43 = vld [vmem:[#allocation2 + $0x1b0] sm:$0xff]  }
  0xe3   : > { %v389_v4 = vadd.s32 %v381_v0, %v362_v46  ;;  %vm427_vm8 = vcmp.eq.s32.totalorder %v1673_v47, %v1741_v7  ;;  %v337_v9 = vadd.s32 %v1847_v18, %v1831_v14  ;;  %v492_v11 = vsel %vm484_vm7, 1, %v1552_v1  ;;  %v1438_v18 = vld [vmem:[#allocation2 + $0x168] sm:$0xff]  }
  0xe4   : > { %v446_v8 = vadd.s32 %v438_v62, %v419_v52  ;;  %v506_v10 = vcvt.s32.f32 %v498_v2  ;;  %1298 = vmatpush3.bf16.msra.mxu1 %v1425_v54  ;;  %v356_v53 = vsel %vm348_vm10, 1, %v1552_v1  ;;  %vm375_vm11 = vcmp.eq.s32.totalorder %v1686_v50, %v1708_v55  ;;  %v1433_v55 = vld [vmem:[#allocation2 + $0x198] sm:$0xff]  }
  0xe5   : > { %1280 = vmatpush3.bf16.msra.mxu0 %v1432_v45  ;;  %v416_v13 = vadd.s32 %v408_v5, %v389_v4  ;;  %1299 = vmatprep.subr.bf16.mxu1 %v1427_v44  ;;  %v364_v19 = vadd.s32 %v356_v53, %v337_v9  ;;  %v435_v51 = vsel %vm427_vm8, 1, %v1552_v1  ;;  %v383_v20 = vsel %vm375_vm11, 1, %v1552_v1 }
  0xe6   : > { %v473_v15 = vadd.s32 %v465_v3, %v446_v8  ;;  %1281 = vmatprep.subr.bf16.mxu0 %v1434_v63  ;;  %v514_v14 = vpack.c.bf16 %v506_v10, %v506_v10  ;;  %vm402_vm9 = vcmp.eq.s32.totalorder %v1686_v50, %v1739_v6  ;;  %vm454_vm10 = vcmp.eq.s32.totalorder %v1673_v47, %v1761_v22  ;;  %v1440_v6 = vld [vmem:[#allocation2 + $0x128] sm:$0xff]  }
  0xe7   : > { %v391_v21 = vadd.s32 %v383_v20, %v364_v19  ;;  %v410_v23 = vsel %vm402_vm9, 1, %v1552_v1  ;;  %v443_v26 = vadd.s32 %v435_v51, %v416_v13  ;;  %vm481_vm12 = vcmp.eq.s32.totalorder %v1673_v47, %v1790_v38 }
  0xe8   : > { %v500_v48 = vadd.s32 %v492_v11, %v473_v15  ;;  %1013 = vmatprep.mubr.bf16.mxu0 %v514_v14  ;;  %1300 = vmatpush3.bf16.msra.mxu1 %v1429_v12  ;;  %vm429_vm14 = vcmp.eq.s32.totalorder %v1686_v50, %v1741_v7  ;;  %v462_v27 = vsel %vm454_vm10, 1, %v1552_v1  ;;  %v489_v32 = vsel %vm481_vm12, 1, %v1552_v1  ;;  %v1444_v7 = vld [vmem:[#allocation2 + $0x130] sm:$0xff]  }
  0xe9   : > { %1301 = vmatprep.subr.bf16.mxu1 %v1431_v16  ;;  %1282 = vmatpush3.bf16.msra.mxu0 %v1436_v17  ;;  %v418_v30 = vadd.s32 %v410_v23, %v391_v21  ;;  %v437_v49 = vsel %vm429_vm14, 1, %v1552_v1  ;;  %v470_v47 = vadd.s32 %v462_v27, %v443_v26  ;;  %vm456_vm15 = vcmp.eq.s32.totalorder %v1686_v50, %v1761_v22 }
  0xea   : > { %v508_v24 = vcvt.s32.f32 %v500_v48  ;;  %1283 = vmatprep.subr.bf16.mxu0 %v1438_v18  ;;  %vm483_vm13 = vcmp.eq.s32.totalorder %v1686_v50, %v1790_v38  ;;  %v464_v37 = vsel %vm456_vm15, 1, %v1552_v1  ;;  %v1449_v38 = vld [vmem:[#allocation2 + $0x1b8] sm:$0xff]  }
  0xeb   : > { %v497_v34 = vadd.s32 %v489_v32, %v470_v47  ;;  %v445_v35 = vadd.s32 %v437_v49, %v418_v30  ;;  %v491_v41 = vsel %vm483_vm13, 1, %v1552_v1 }
  0xec   : > { %v516_v28 = vpack.c.bf16 %v508_v24, %v508_v24  ;;  %1302 = vmatpush3.bf16.msra.mxu1 %v1433_v55 }
  0xed   : > { %1303 = vmatprep.subr.bf16.mxu1 %v1435_v25  ;;  %1284 = vmatpush3.bf16.msra.mxu0 %v1440_v6  ;;  %v505_v22 = vcvt.s32.f32 %v497_v34  ;;  %v472_v42 = vadd.s32 %v464_v37, %v445_v35 }
  0xee   : > { %1053 = vmatprep.mubr.bf16.mxu1 %v516_v28  ;;  %1285 = vmatprep.subr.bf16.mxu0 %v1442_v29 }
  0xef   : > { %v499_v58 = vadd.s32 %v491_v41, %v472_v42  ;;  %v513_v50 = vpack.c.bf16 %v505_v22, %v505_v22 }
  0xf0   : > { %1304 = vmatpush3.bf16.msra.mxu1 %v1437_v31 }
  0xf1   : > { %1305 = vmatprep.subr.bf16.mxu1 %v1439_v33  ;;  %1286 = vmatpush3.bf16.msra.mxu0 %v1444_v7  ;;  %v507_v59 = vcvt.s32.f32 %v499_v58 }
  0xf2   : > { %1287 = vmatprep.subr.bf16.mxu0 %v1446_v56 }
  0xf3   : > { %v515_v60 = vpack.c.bf16 %v507_v59, %v507_v59 }
  0xf4   : > { %1306 = vmatpush3.bf16.msra.mxu1 %v1441_v36 }
  0xf5   : > { %1307 = vmatprep.subr.bf16.mxu1 %v1443_v39  ;;  %1288 = vmatpush3.bf16.msra.mxu0 %v1448_v40 }
  0xf8   : > { %1308 = vmatpush3.bf16.msra.mxu1 %v1445_v43  ;;  %1014 = vmatmul.mubr.bf16.vlgmr.msra.gmra.mrb[4].mxu0 %v513_v50 }
  0xf9   : > { %1309 = vmatprep.subr.bf16.mxu1 %v1447_v57 }
  0xfc   : > { %1310 = vmatpush3.bf16.msra.mxu1 %v1449_v38 }
  0xff   : > { %1054 = vmatmul.mubr.bf16.vlgmr.msra.gmra.mrb[4].mxu1 %v515_v60 }
 0x1ab   : > { %v1245_v61 = vpop.f32.mrb[0].mxu0 }
 0x1ac   : > { %v1246_v1 = vpop.f32.mrb[1].mxu0 }
 0x1ad   : > { %v1247_v62 = vadd.f32 %v1246_v1, %v1245_v61  ;;  %v1248_v54 = vpop.f32.mrb[2].mxu0 }
 0x1ae   : > { %v1249_v45 = vpop.f32.mrb[3].mxu0 }
 0x1b2   : > { %v1267_v46 = vpop.f32.mrb[0].mxu1 }
 0x1b3   : > { %v1268_v52 = vpop.f32.mrb[1].mxu1 }
 0x1b4   : > { %v1269_v44 = vadd.f32 %v1268_v52, %v1267_v46  ;;  %v1270_v63 = vpop.f32.mrb[2].mxu1 }
 0x1b5   : > { %v1271_v0 = vpop.f32.mrb[3].mxu1 }
 0x1b6   : > { %v976_v2 = vadd.f32 %v1269_v44, %v1247_v62 }
 0x1cb   : > { %v1289_v3 = vpop.f32.mrb[4].mxu0 }
 0x1cc   : > { %v1290_v4 = vpop.f32.mrb[5].mxu0 }
 0x1cd   : > { %v1291_v5 = vadd.f32 %v1290_v4, %v1289_v3  ;;  %v1292_v8 = vpop.f32.mrb[6].mxu0 }
 0x1ce   : > { %v1293_v9 = vpop.f32.mrb[7].mxu0 }
 0x1cf   : > { %v1016_v10 = vadd.f32 %v1291_v5, %v976_v2 }
 0x1d2   : > { %v1311_v11 = vpop.f32.mrb[4].mxu1 }
 0x1d3   : > { %v1312_v12 = vpop.f32.mrb[5].mxu1 }
 0x1d4   : > { %v1313_v13 = vadd.f32 %v1312_v12, %v1311_v11  ;;  %v1314_v53 = vpop.f32.mrb[6].mxu1 }
 0x1d5   : > { %v1315_v15 = vpop.f32.mrb[7].mxu1 }
 0x1d6   : > { %v1056_v16 = vadd.f32 %v1313_v13, %v1016_v10 }
 0x1d8   : > { %v1061_v17 = vmul.f32 %v1056_v16, %v1056_v16 }
 0x1da   : > { %1062 = vadd.xlane.f32.xlu0 %v1061_v17 }
 0x267   : > { %v1063_v19 = vpop.xlane.xlu0 %1062 }
 0x268   : > { %v1064_v14 = vmax.f32 %v1063_v19, 1e-12 }
 0x26a   : > { %1450 = vrsqrt.f32 %v1064_v14 }
 0x274   : > { %v1451_v18 = vpop.eup %1450 }
 0x275   : > { %v1066_v51 = vmul.f32 %v1451_v18, %v1056_v16 }
 0x277   : > { %1067 = vst [vmem:[%s149_s26] sm:$0xff] %v1066_v51 }
 0x278   : > { %1493 = shalt.err (!%p1490_p7)
}
 0x279   : > { %s1494_s7 = scalar_lea.hbm %s1948_s30, 128  ;;  %s1498_s16 = scalar_lea.hbm %s1992_s2, 256 }
 0x27a   : > { %p1495_p8 = scmp.ne.s32.totalorder %s1948_s30, %s1494_s7  ;;  %p1499_p1 = scmp.lt.u32.totalorder %s1948_s30, %s1992_s2 }
 0x27b   : > { %p1500_p0 = scmp.lt.u32.totalorder %s1498_s16, %s1494_s7  ;;  %p1502_p6 = scmp.lt.u32.totalorder %s1494_s7, %s1948_s30 }
 0x27c   : > { %p1496_p11 = pnand %p1495_p8, %p2003_p9 }
 0x27d   : > { %p1501_p5 = por %p1500_p0, %p1499_p1 }
 0x27e   : > { %p1497_p13 = pneg %p1496_p11 }
 0x27f   : > { %p1503_p10 = por %p1502_p6, %p1501_p5 }
 0x281   : > { %p1504_p12 = pnand %p1503_p10, %p1497_p13 }
 0x283   : > { %1507 = shalt.err (!%p1504_p12)
}
 0x284   : > { %1321 = dma.vmem_to_hbm [thread:$0]  (%p2003_p9), %s1950_s27, 128, %s1948_s30, %s1069_s3  }
 0x285 PF: > { %p1333_p2 = scmp.ge.s32.totalorder %s1546_s12, 2  ;;  %s1094_s21 = sand.u32 1, %s1534_s9  }
 0x286   : > { %p2004_p3 = scmp.ne.s32.totalorder %s1997_s20, 0  ;;  %s1095_s23 = scalar_lea.sflag [#allocation4], %s1094_s21 }
 0x288   : > { %p1328_p4 = pnand %p1333_p2, %p2004_p3 }
 0x28a   : > { %1529 = dma.done.wait (!%p1328_p4), %s1095_s23, 128  }
 0x28b   : > { %1531 = vsyncadd (!%p1328_p4), %s1095_s23, 4294967168  ;;  %p13_p7 = scmp.ge.s32.totalorder %s1600_s15, 4   ;;  %s2005_s9 = smov %s1538_s10 }
 0x28c   : > { %s2006_s10 = smov %s1542_s11  ;;  %s2007_s11 = smov %s1611_s18 }
 0x28d   : > { %s2008_s12 = smov %s1600_s15  ;;  %15 = sbr.rel (!%p13_p7) target bundleno = 4 (0x4), region = 68 }
 0x294   :  { %1100 = vsyncpa [#allocation3], 1 }
 0x295   :  { %1102 = vsyncpa [#allocation3 + $0x1], 1 }
 0x296   :  { %1103 = vsyncpa [#allocation4], 1 }
 0x297   :  { %1105 = vsyncpa [#allocation4 + $0x1], 1 }

</bundles_post_ra>
